<compile_context>
chip_gen: v5e
topology: v5e:2x2
jax: 0.10.0
libtpu: 0.0.40
codegen_flags: <defaults>
</compile_context>

<pallas_src>
import functools

import jax
import jax.numpy as jnp
from jax.experimental import pallas as pl
from jax.experimental.pallas import tpu as pltpu


# Whole-array single-block path is used up to this many bytes per operand.
# (in + out, single-buffered => far under the default scoped-VMEM limit on
# every TPU generation, including v7x's 64 MiB physical VMEM.)
_MAX_FULL_BLOCK_BYTES = 4 * 1024 * 1024
# Lane-dense column tile for the large-activation grid path
# (8 x 32768 f32 = 1 MiB per block; double-buffered in+out = 4 MiB VMEM).
_TILE_COLS = 32 * 1024


def _relu_kernel(x_ref, o_ref):
    # Elementwise ReLU on the VMEM tile (VPU); scalar broadcast, no zeros tile.
    o_ref[...] = jnp.maximum(x_ref[...], 0.0)


def _relu_pallas_impl(x, max_block_bytes):
    """ReLU with torch.nn.ReLU(inplace=True) forward semantics."""
    orig_shape = x.shape
    total = x.size
    if total == 0:
        return x

    # Lane-dense 2-D view: fill all 8 sublanes when possible, wide lane dim.
    rows = 1
    for r in (8, 4, 2):
        if total % r == 0:
            rows = r
            break
    cols = total // rows
    x2d = x.reshape(rows, cols)
    nbytes = total * x.dtype.itemsize

    if nbytes <= max_block_bytes:
        # Single whole-array VMEM block: no grid, no index_map, no pipeline.
        out2d = pl.pallas_call(
            _relu_kernel,
            out_shape=jax.ShapeDtypeStruct(x2d.shape, x2d.dtype),
            input_output_aliases={0: 0},  # reuse input HBM buffer (inplace=True)
        )(x2d)
    else:
        # Large activations: lane-dense (rows, tcol) blocks, column axis
        # "parallel" (megacore-shardable); blocks sized for v7x VMEM.
        if cols % 128 == 0 or cols < 128:
            tcol = min(_TILE_COLS, cols)
        else:
            tcol = min(_TILE_COLS, (cols // 128) * 128)
        out2d = pl.pallas_call(
            _relu_kernel,
            out_shape=jax.ShapeDtypeStruct(x2d.shape, x2d.dtype),
            grid=(pl.cdiv(cols, tcol),),
            in_specs=[pl.BlockSpec((rows, tcol), lambda j: (0, j))],
            out_specs=pl.BlockSpec((rows, tcol), lambda j: (0, j)),
            input_output_aliases={0: 0},
            compiler_params=pltpu.CompilerParams(
                dimension_semantics=("parallel",)),
        )(x2d)

    return out2d.reshape(orig_shape)


@functools.partial(jax.jit, donate_argnums=0)
def relu_pallas(x):
    return _relu_pallas_impl(x, _MAX_FULL_BLOCK_BYTES)


class M:
    """JAX/Pallas equivalent of the PyTorch module (a single ReLU(inplace=True))."""

    def __call__(self, x203):
        return relu_pallas(x203)


if __name__ == "__main__":
    key = jax.random.PRNGKey(0)
    shape = (1, 400, 7, 7)  # matches the PyTorch module's input (NCHW)
    x203 = jax.random.normal(key, shape, dtype=jnp.float32)

    # Reference, computed & materialized before the input buffer is donated.
    ref = jax.block_until_ready(jnp.maximum(x203, 0.0))

    # Exercise the tiled (grid) fallback path with a tiny block budget.
    tiled_fn = jax.jit(lambda x: _relu_pallas_impl(x, 16 * 1024))
    out_tiled = jax.block_until_ready(tiled_fn(x203))
    assert out_tiled.shape == shape and out_tiled.dtype == jnp.float32
    assert jnp.allclose(out_tiled, ref), "Pallas tiled ReLU mismatch"

    # Main path: single whole-array VMEM block, donated input (inplace semantics).
    m = M()
    x204 = jax.block_until_ready(m(x203))
    assert x204.shape == shape and x204.dtype == jnp.float32
    assert jnp.allclose(x204, ref), "Pallas ReLU mismatch"

    print("KERNEL_OK")
</pallas_src>

<mosaic_0001>
module attributes {stable_mosaic.version = 11 : i64} {
  func.func @_relu_kernel(%arg0: i32, %arg1: memref<8x2432xf32, #tpu.memory_space<vmem>>, %arg2: memref<8x2432xf32, #tpu.memory_space<vmem>>) attributes {dimension_semantics = [#tpu.dimension_semantics<parallel>], iteration_bounds = array<i64: 2>, scalar_prefetch = 0 : i64, scratch_operands = 0 : i64, tpu.core_type = #tpu.core_type<tc>, window_params = [{transform_indices = @transform_0, window_bounds = array<i64: 8, 2432>}, {transform_indices = @transform_1, window_bounds = array<i64: 8, 2432>}]} {
    %c0 = arith.constant 0 : index
    %c0_0 = arith.constant 0 : index
    %0 = vector.load %arg1[%c0, %c0_0] : memref<8x2432xf32, #tpu.memory_space<vmem>>, vector<8x2432xf32>
    %cst = arith.constant 0.000000e+00 : f32
    %1 = vector.broadcast %cst : f32 to vector<8x2432xf32>
    %2 = arith.maximumf %0, %1 : vector<8x2432xf32>
    %c0_1 = arith.constant 0 : index
    %c0_2 = arith.constant 0 : index
    %3 = vector.load %arg2[%c0_1, %c0_2] : memref<8x2432xf32, #tpu.memory_space<vmem>>, vector<8x2432xf32>
    tpu.vector_store %arg2[%c0_1, %c0_2], %2 {strides = array<i32>} : memref<8x2432xf32, #tpu.memory_space<vmem>>, vector<8x2432xf32>,
    return
  }
  func.func @transform_0(%arg0: i32) -> (i32, i32) {
    %c0_i32 = arith.constant 0 : i32
    %c0_i32_0 = arith.constant 0 : i32
    return %c0_i32, %arg0 : i32, i32
  }
  func.func @transform_1(%arg0: i32) -> (i32, i32) {
    %c0_i32 = arith.constant 0 : i32
    %c0_i32_0 = arith.constant 0 : i32
    return %c0_i32, %arg0 : i32, i32
  }
}

</mosaic_0001>

<bundles_post_ra>
// kernel: _lambda_.1
= control target key start
LH: loop header
LB: loop body
LE: loop exit
PB: predicated region body
PF: predicated region fallthrough
CT: control target
= control target key end

     0   :  { %s968_s6 = smov 0   ;;  %s970_s7 = smov 0   ;;  %s1339_s0 = inlined_call_operand.vmem [shape: f32[8,2450], index: 0, kind: input, shape index: {}, may-alias: {0,1}]   ;;  %s1340_s1 = inlined_call_operand.vmem [shape: f32[8,2450], index: 1, kind: output, shape index: {}, may-alias: {0,1}]  }
   0x1   :  { %s972_s8 = smov 0  }
   0x2 LB: > { %s979_s9 = sadd.s32 4294967295, %s890_s8   ;;  %s981_s10 = sadd.s32 1, %s890_s8   ;;  %s890_s8 = sphi %s972_s8, %s1354_s8   ;;  %s886_s7 = sphi %s970_s7, %s1353_s7   ;;  %s882_s6 = sphi %s968_s6, %s1352_s6  }
   0x3   : > { %s41_s11 = ssub.s32 %s890_s8, %s981_s10  ;;  %s44_s12 = sadd.s32 1, %s886_s7 }
   0x4   : > { %p42_p0 = scmp.eq.s32.totalorder %s41_s11, 0  ;;  %p54_p1 = scmp.ne.s32.totalorder %s886_s7, %s882_s6 }
   0x5   : > { %p55_p2 = scmp.eq.s32.totalorder %s979_s9, 1  ;;  %p613_p3 = scmp.ge.s32.totalorder %s890_s8, 1 }
   0x6   : > { %s988_s13 = scalar_select %p42_p0, %s886_s7, %s44_s12  }
   0x7   : > { %p990_p4 = por %p55_p2, %p54_p1  ;;  %p96_p5 = scmp.lt.s32.totalorder %s890_s8, 3 }
   0x9   : > { %p97_p6 = pnand %p613_p3, %p96_p5 }
   0xa   : > { %s116_s15 = sand.u32 (!%p97_p6), 1, %s882_s6   ;;  %s995_s16 = smul.u32 (!%p97_p6), 19, %s979_s9 }
   0xb   : > { %100 = sbr.rel (%p97_p6) target bundleno = 190 (0xbe), region = 24 }
   0xc   : > { %p124_p7 = scmp.lt.s32.totalorder (!%p97_p6), %s995_s16, 19  ;;  %s649_s17 = smul.u32 (!%p97_p6), 152, %s116_s15 }
   0xe   : > { %s1011_s23 = scalar_lea.vmem (!%p97_p6), [#allocation2], %s649_s17  }
  0x10   : > { %s125_s18 = scalar_select %p124_p7, %s995_s16, 19 }
  0x11   : > { %s203_s24 = ssub.s32 (%p990_p4), 20, %s995_s16  ;;  %s644_s25 = smul.u32 (%p990_p4), 152, %s979_s9 }
  0x12   : > { %s614_s19 = sshll.u32 %s125_s18, 3  ;;  %p204_p8 = scmp.lt.s32.totalorder (%p990_p4), %s203_s24, 19 }
  0x13   : > { %s1002_s22 = scalar_lea.vmem %s1339_s0, %s614_s19  ;;  %s1051_s28 = scalar_lea.vmem (%p990_p4), %s1340_s1, %s644_s25  }
  0x14   : > { %v138_v0 = vld [vmem:[%s1002_s22] sm:$0xff]  ;;  %v139_v1 = vld [vmem:[%s1002_s22 + $0x8] sm:$0xff]  ;;  %v140_v2 = vld [vmem:[%s1002_s22 + $0x10] sm:$0xff] }
  0x15   : > { %v157_v3 = vmax.f32 %v138_v0, 0.0  ;;  %v158_v4 = vmax.f32 %v139_v1, 0.0  ;;  %v159_v5 = vmax.f32 %v140_v2, 0.0  ;;  %v141_v6 = vld [vmem:[%s1002_s22 + $0x18] sm:$0xff]  ;;  %v142_v7 = vld [vmem:[%s1002_s22 + $0x20] sm:$0xff]  ;;  %v143_v8 = vld [vmem:[%s1002_s22 + $0x28] sm:$0xff] }
  0x16   : > { %v160_v9 = vmax.f32 %v141_v6, 0.0  ;;  %v144_v10 = vld [vmem:[%s1002_s22 + $0x30] sm:$0xff]  ;;  %v161_v11 = vmax.f32 %v142_v7, 0.0  ;;  %v145_v12 = vld [vmem:[%s1002_s22 + $0x38] sm:$0xff]  ;;  %v162_v13 = vmax.f32 %v143_v8, 0.0  ;;  %v146_v14 = vld [vmem:[%s1002_s22 + $0x40] sm:$0xff] }
  0x17   : > { %176 = vst [vmem:[%s1011_s23] sm:$0xff] %v157_v3  ;;  %v163_v15 = vmax.f32 %v144_v10, 0.0  ;;  %v147_v16 = vld [vmem:[%s1002_s22 + $0x48] sm:$0xff]  ;;  %v164_v17 = vmax.f32 %v145_v12, 0.0  ;;  %v148_v18 = vld [vmem:[%s1002_s22 + $0x50] sm:$0xff]  ;;  %v165_v19 = vmax.f32 %v146_v14, 0.0  ;;  %v149_v20 = vld [vmem:[%s1002_s22 + $0x58] sm:$0xff] }
  0x18   : > { %177 = vst [vmem:[%s1011_s23 + $0x8] sm:$0xff] %v158_v4  ;;  %v166_v21 = vmax.f32 %v147_v16, 0.0  ;;  %v150_v22 = vld [vmem:[%s1002_s22 + $0x60] sm:$0xff]  ;;  %v167_v23 = vmax.f32 %v148_v18, 0.0  ;;  %v151_v24 = vld [vmem:[%s1002_s22 + $0x68] sm:$0xff]  ;;  %v168_v25 = vmax.f32 %v149_v20, 0.0 }
  0x19   : > { %178 = vst [vmem:[%s1011_s23 + $0x10] sm:$0xff] %v159_v5  ;;  %v152_v26 = vld [vmem:[%s1002_s22 + $0x70] sm:$0xff]  ;;  %v169_v27 = vmax.f32 %v150_v22, 0.0  ;;  %v153_v28 = vld [vmem:[%s1002_s22 + $0x78] sm:$0xff]  ;;  %v170_v29 = vmax.f32 %v151_v24, 0.0  ;;  %v154_v30 = vld [vmem:[%s1002_s22 + $0x80] sm:$0xff] }
  0x1a   : > { %179 = vst [vmem:[%s1011_s23 + $0x18] sm:$0xff] %v160_v9  ;;  %v171_v31 = vmax.f32 %v152_v26, 0.0  ;;  %v155_v32 = vld [vmem:[%s1002_s22 + $0x88] sm:$0xff]  ;;  %v172_v33 = vmax.f32 %v153_v28, 0.0  ;;  %v156_v34 = vld [vmem:[%s1002_s22 + $0x90] sm:$0xff]  ;;  %v173_v35 = vmax.f32 %v154_v30, 0.0 }
  0x1b   : > { %180 = vst [vmem:[%s1011_s23 + $0x20] sm:$0xff] %v161_v11  ;;  %v174_v36 = vmax.f32 %v155_v32, 0.0  ;;  %v175_v37 = vmax.f32 %v156_v34, 0.0 }
  0x1c   : > { %181 = vst [vmem:[%s1011_s23 + $0x28] sm:$0xff] %v162_v13 }
  0x1d   : > { %182 = vst [vmem:[%s1011_s23 + $0x30] sm:$0xff] %v163_v15 }
  0x1e   : > { %183 = vst [vmem:[%s1011_s23 + $0x38] sm:$0xff] %v164_v17 }
  0x1f   : > { %184 = vst [vmem:[%s1011_s23 + $0x40] sm:$0xff] %v165_v19 }
  0x20   : > { %185 = vst [vmem:[%s1011_s23 + $0x48] sm:$0xff] %v166_v21 }
  0x21   : > { %186 = vst [vmem:[%s1011_s23 + $0x50] sm:$0xff] %v167_v23 }
  0x22   : > { %187 = vst [vmem:[%s1011_s23 + $0x58] sm:$0xff] %v168_v25 }
  0x23   : > { %188 = vst [vmem:[%s1011_s23 + $0x60] sm:$0xff] %v169_v27 }
  0x24   : > { %189 = vst [vmem:[%s1011_s23 + $0x68] sm:$0xff] %v170_v29 }
  0x25   : > { %190 = vst [vmem:[%s1011_s23 + $0x70] sm:$0xff] %v171_v31  ;;  %201 = sbr.rel (!%p990_p4) target bundleno = 190 (0xbe), region = 28 }
  0x26   : > { %191 = vst [vmem:[%s1011_s23 + $0x78] sm:$0xff] %v172_v33 }
  0x27   : > { %192 = vst [vmem:[%s1011_s23 + $0x80] sm:$0xff] %v173_v35 }
  0x28   : > { %193 = vst [vmem:[%s1011_s23 + $0x88] sm:$0xff] %v174_v36 }
  0x29   : > { %194 = vst [vmem:[%s1011_s23 + $0x90] sm:$0xff] %v175_v37 }
  0x2a   : > { %s1356_s24 = smov (!%p204_p8, %s203_s24), 19 }
  0x2b   : > { %s1053_s29 = sshll.u32 %s1356_s24, 3 }
  0x2c   : > { %p619_p9 = scmp.eq.s32.totalorder %s1053_s29, 0 }
  0x2d   : > { %p214_p10 = scmp.lt.u32.totalorder (!%p619_p9), %s1053_s29, 8 }
  0x2e   : > { %213 = sbr.rel (%p619_p9) target bundleno = 190 (0xbe), region = 32 }
  0x33   : > { %217 = sbr.rel (%p214_p10) target bundleno = 181 (0xb5), region = 36  ;;  %s1058_s30 = sand.u32 (!%p214_p10), 7, %s1053_s29  }
  0x34   : > { %p234_p11 = scmp.eq.s32.totalorder (!%p214_p10), %s1058_s30, 0  ;;  %p620_p12 = scmp.ne.s32.totalorder (!%p214_p10), %s1058_s30, 0 }
  0x38   : > { %237 = sbr.rel (%p620_p12) target bundleno = 116 (0x74), region = 51  ;;  %s238_s2 = sshrl.u32 (!%p620_p12), %s1053_s29, 3 }
  0x39   : > { %s1065_s3 = sshrl.u32 (!%p620_p12), %s238_s2, 5 }
  0x3a   : > { %p621_p13 = scmp.le.s32.totalorder (!%p620_p12), %s1065_s3, 0 }
  0x3d   : > { %538 = sbr.rel (%p621_p13) target bundleno = 99 (0x63), region = 132  ;;  %s1342_s4 = smov (!%p621_p13), %s1051_s28 }
  0x3e   : > { %s1343_s5 = smov (!%p621_p13), %s1011_s23  ;;  %s1074_s6 = smov (!%p621_p13), 0  }
  0x3f   : > { %s1076_s8 = smov (!%p621_p13), 0  }
  0x42 LB: >> { %v249_v38 = vld [vmem:[%s898_s5] sm:$0xff]  ;;  %v251_v39 = vld [vmem:[%s898_s5 + $0x8] sm:$0xff]  ;;  %v253_v40 = vld [vmem:[%s898_s5 + $0x10] sm:$0xff]  ;;  %s313_s9 = sadd.s32 1, %s902_s6  ;;  %s243_s8 = sadd.s32 1, %s906_s8   ;;  %s906_s8 = sphi %s1076_s8, %s243_s8   ;;  %s902_s6 = sphi %s1074_s6, %s1346_s6   ;;  %s898_s5 = sphi %s1343_s5, %s1345_s5   ;;  %s894_s4 = sphi %s1342_s4, %s1344_s4  }
  0x43   : >> { %250 = vst [vmem:[%s894_s4] sm:$0xff] %v249_v38  ;;  %v255_v41 = vld [vmem:[%s898_s5 + $0x18] sm:$0xff]  ;;  %p314_p0 = scmp.ge.s32.totalorder %s313_s9, %s1065_s3  ;;  %v257_v42 = vld [vmem:[%s898_s5 + $0x20] sm:$0xff]  ;;  %v259_v43 = vld [vmem:[%s898_s5 + $0x28] sm:$0xff]  ;;  %p242_p1 = scmp.ge.s32.totalorder %s243_s8, %s1065_s3 }
  0x44   : >> { %252 = vst [vmem:[%s894_s4 + $0x8] sm:$0xff] %v251_v39  ;;  %v261_v44 = vld [vmem:[%s898_s5 + $0x30] sm:$0xff]  ;;  %v263_v45 = vld [vmem:[%s898_s5 + $0x38] sm:$0xff]  ;;  %v265_v46 = vld [vmem:[%s898_s5 + $0x40] sm:$0xff] }
  0x45   : >> { %254 = vst [vmem:[%s894_s4 + $0x10] sm:$0xff] %v253_v40  ;;  %s1358_s9 = smov (%p314_p0, %s313_s9), 0  ;;  %v267_v47 = vld [vmem:[%s898_s5 + $0x48] sm:$0xff]  ;;  %v269_v48 = vld [vmem:[%s898_s5 + $0x50] sm:$0xff]  ;;  %v271_v49 = vld [vmem:[%s898_s5 + $0x58] sm:$0xff] }
  0x46   : >> { %256 = vst [vmem:[%s894_s4 + $0x18] sm:$0xff] %v255_v41  ;;  %s622_s11 = sshll.u32 %s1358_s9, 8  ;;  %v273_v50 = vld [vmem:[%s898_s5 + $0x60] sm:$0xff]  ;;  %v275_v51 = vld [vmem:[%s898_s5 + $0x68] sm:$0xff]  ;;  %v277_v52 = vld [vmem:[%s898_s5 + $0x70] sm:$0xff]  ;;  %s1346_s6 = smov %s1358_s9 }
  0x47   : >> { %258 = vst [vmem:[%s894_s4 + $0x20] sm:$0xff] %v257_v42  ;;  %s1108_s12 = scalar_lea.vmem %s1011_s23, %s622_s11 [#allocation2]   ;;  %s1111_s14 = scalar_lea.vmem %s1051_s28, %s622_s11   ;;  %v279_v53 = vld [vmem:[%s898_s5 + $0x78] sm:$0xff]  ;;  %v281_v54 = vld [vmem:[%s898_s5 + $0x80] sm:$0xff]  ;;  %v283_v55 = vld [vmem:[%s898_s5 + $0x88] sm:$0xff] }
  0x48   : >> { %260 = vst [vmem:[%s894_s4 + $0x28] sm:$0xff] %v259_v43  ;;  %v285_v56 = vld [vmem:[%s898_s5 + $0x90] sm:$0xff]  ;;  %v287_v57 = vld [vmem:[%s898_s5 + $0x98] sm:$0xff]  ;;  %v289_v58 = vld [vmem:[%s898_s5 + $0xa0] sm:$0xff] }
  0x49   : >> { %262 = vst [vmem:[%s894_s4 + $0x30] sm:$0xff] %v261_v44  ;;  %v291_v59 = vld [vmem:[%s898_s5 + $0xa8] sm:$0xff]  ;;  %v293_v60 = vld [vmem:[%s898_s5 + $0xb0] sm:$0xff]  ;;  %v295_v61 = vld [vmem:[%s898_s5 + $0xb8] sm:$0xff] }
  0x4a   : >> { %264 = vst [vmem:[%s894_s4 + $0x38] sm:$0xff] %v263_v45  ;;  %v297_v62 = vld [vmem:[%s898_s5 + $0xc0] sm:$0xff]  ;;  %v299_v63 = vld [vmem:[%s898_s5 + $0xc8] sm:$0xff]  ;;  %v301_v0 = vld [vmem:[%s898_s5 + $0xd0] sm:$0xff] }
  0x4b   : >> { %266 = vst [vmem:[%s894_s4 + $0x40] sm:$0xff] %v265_v46  ;;  %v303_v1 = vld [vmem:[%s898_s5 + $0xd8] sm:$0xff]  ;;  %v305_v2 = vld [vmem:[%s898_s5 + $0xe0] sm:$0xff]  ;;  %v307_v3 = vld [vmem:[%s898_s5 + $0xe8] sm:$0xff] }
  0x4c   : >> { %268 = vst [vmem:[%s894_s4 + $0x48] sm:$0xff] %v267_v47  ;;  %v309_v4 = vld [vmem:[%s898_s5 + $0xf0] sm:$0xff]  ;;  %v311_v5 = vld [vmem:[%s898_s5 + $0xf8] sm:$0xff]  ;;  %s1345_s5 = smov %s1108_s12 }
  0x4d   : >> { %270 = vst [vmem:[%s894_s4 + $0x50] sm:$0xff] %v269_v48 }
  0x4e   : >> { %272 = vst [vmem:[%s894_s4 + $0x58] sm:$0xff] %v271_v49 }
  0x4f   : >> { %274 = vst [vmem:[%s894_s4 + $0x60] sm:$0xff] %v273_v50 }
  0x50   : >> { %276 = vst [vmem:[%s894_s4 + $0x68] sm:$0xff] %v275_v51 }
  0x51   : >> { %278 = vst [vmem:[%s894_s4 + $0x70] sm:$0xff] %v277_v52 }
  0x52   : >> { %280 = vst [vmem:[%s894_s4 + $0x78] sm:$0xff] %v279_v53 }
  0x53   : >> { %282 = vst [vmem:[%s894_s4 + $0x80] sm:$0xff] %v281_v54 }
  0x54   : >> { %284 = vst [vmem:[%s894_s4 + $0x88] sm:$0xff] %v283_v55 }
  0x55   : >> { %286 = vst [vmem:[%s894_s4 + $0x90] sm:$0xff] %v285_v56 }
  0x56   : >> { %288 = vst [vmem:[%s894_s4 + $0x98] sm:$0xff] %v287_v57 }
  0x57   : >> { %290 = vst [vmem:[%s894_s4 + $0xa0] sm:$0xff] %v289_v58 }
  0x58   : >> { %292 = vst [vmem:[%s894_s4 + $0xa8] sm:$0xff] %v291_v59 }
  0x59   : >> { %294 = vst [vmem:[%s894_s4 + $0xb0] sm:$0xff] %v293_v60 }
  0x5a   : >> { %296 = vst [vmem:[%s894_s4 + $0xb8] sm:$0xff] %v295_v61 }
  0x5b   : >> { %298 = vst [vmem:[%s894_s4 + $0xc0] sm:$0xff] %v297_v62 }
  0x5c   : >> { %300 = vst [vmem:[%s894_s4 + $0xc8] sm:$0xff] %v299_v63 }
  0x5d   : >> { %302 = vst [vmem:[%s894_s4 + $0xd0] sm:$0xff] %v301_v0 }
  0x5e   : >> { %304 = vst [vmem:[%s894_s4 + $0xd8] sm:$0xff] %v303_v1  ;;  %245 = sbr.rel (!%p242_p1) target bundleno = 66 (0x42), region = 138 }
  0x5f   : >> { %306 = vst [vmem:[%s894_s4 + $0xe0] sm:$0xff] %v305_v2 }
  0x60   : >> { %308 = vst [vmem:[%s894_s4 + $0xe8] sm:$0xff] %v307_v3 }
  0x61   : >> { %310 = vst [vmem:[%s894_s4 + $0xf0] sm:$0xff] %v309_v4 }
  0x62   : >> { %312 = vst [vmem:[%s894_s4 + $0xf8] sm:$0xff] %v311_v5  ;;  %s1344_s4 = smov %s1111_s14 }
  0x63 PF: > { %s1177_s15 = sand.u32 31, %s238_s2   ;;  %s645_s16 = sshll.u32 %s1065_s3, 8 }
  0x64   : > { %s324_s17 = scalar_lea.vmem %s1011_s23, %s645_s16 [#allocation2]   ;;  %s326_s18 = scalar_lea.vmem %s1051_s28, %s645_s16  }
  0x65   : > { %p627_p2 = scmp.le.s32.totalorder %s1177_s15, 0 }
  0x66   : > { %s908_s19 = smov (!%p627_p2), %s326_s18   ;;  %s912_s20 = smov (!%p627_p2), %s324_s17  }
  0x67   : > { %552 = sbr.rel (%p627_p2) target bundleno = 116 (0x74), region = 143  ;;  %s916_s21 = smov (!%p627_p2), 0  }
  0x68   : > { %s920_s22 = smov (!%p627_p2), 0  }
  0x6c LB: >> { %v336_v6 = vld [vmem:[%s914_s20] sm:$0xff]  ;;  %s338_s24 = sadd.s32 1, %s918_s21  ;;  %s330_s22 = sadd.s32 1, %s922_s22   ;;  %s922_s22 = sphi %s920_s22, %s330_s22   ;;  %s918_s21 = sphi %s916_s21, %s917_s21   ;;  %s914_s20 = sphi %s912_s20, %s343_s20   ;;  %s910_s19 = sphi %s908_s19, %s344_s19  }
  0x6d   : >> { %337 = vst [vmem:[%s910_s19] sm:$0xff] %v336_v6  ;;  %p339_p3 = scmp.ge.s32.totalorder %s338_s24, %s1177_s15  ;;  %p329_p4 = scmp.ge.s32.totalorder %s330_s22, %s1177_s15 }
  0x6f   : >> { %s1360_s24 = smov (%p339_p3, %s338_s24), 0  ;;  %332 = sbr.rel (!%p329_p4) target bundleno = 108 (0x6c), region = 149 }
  0x70   : >> { %s628_s25 = sshll.u32 %s1360_s24, 3  ;;  %s917_s21 = smov %s1360_s24  }
  0x71   : >> { %s343_s20 = scalar_lea.vmem %s324_s17, %s628_s25 [#allocation2]   ;;  %s344_s19 = scalar_lea.vmem %s326_s18, %s628_s25  }
  0x74 PF: > { %347 = sbr.rel (%p234_p11) target bundleno = 181 (0xb5), region = 69  ;;  %s1189_s26 = ssub.s32 (!%p234_p11), %s1053_s29, %s1058_s30 }
  0x75   : > { %s353_s27 = sshrl.u32 (!%p234_p11), %s1053_s29, 3  ;;  %s350_s2 = scalar_lea.vmem (!%p234_p11), %s1011_s23, %s1189_s26 [#allocation2] }
  0x76   : > { %s352_s3 = scalar_lea.vmem (!%p234_p11), %s1051_s28, %s1189_s26  ;;  %s1198_s4 = sshrl.u32 (!%p234_p11), %s353_s27, 5 }
  0x77   : > { %p630_p5 = scmp.le.s32.totalorder (!%p234_p11), %s1198_s4, 0 }
  0x79   : > { %566 = sbr.rel (%p630_p5) target bundleno = 159 (0x9f), region = 154  ;;  %s1347_s5 = smov (!%p630_p5), %s1051_s28 }
  0x7a   : > { %s1348_s6 = smov (!%p630_p5), %s1011_s23  ;;  %s1207_s8 = smov (!%p630_p5), 0  }
  0x7b   : > { %s1209_s9 = smov (!%p630_p5), 0  }
  0x7e LB: >> { %v364_v7 = vld [vmem:[%s930_s6] sm:$0xff]  ;;  %v366_v8 = vld [vmem:[%s930_s6 + $0x8] sm:$0xff]  ;;  %v368_v9 = vld [vmem:[%s930_s6 + $0x10] sm:$0xff]  ;;  %s428_s11 = sadd.s32 1, %s934_s8  ;;  %s358_s9 = sadd.s32 1, %s938_s9   ;;  %s938_s9 = sphi %s1209_s9, %s358_s9   ;;  %s934_s8 = sphi %s1207_s8, %s1351_s8   ;;  %s930_s6 = sphi %s1348_s6, %s1350_s6   ;;  %s926_s5 = sphi %s1347_s5, %s1349_s5  }
  0x7f   : >> { %365 = vst [vmem:[%s926_s5] sm:$0xff] %v364_v7  ;;  %v370_v10 = vld [vmem:[%s930_s6 + $0x18] sm:$0xff]  ;;  %p429_p6 = scmp.ge.s32.totalorder %s428_s11, %s1198_s4  ;;  %v372_v11 = vld [vmem:[%s930_s6 + $0x20] sm:$0xff]  ;;  %v374_v12 = vld [vmem:[%s930_s6 + $0x28] sm:$0xff]  ;;  %p357_p7 = scmp.ge.s32.totalorder %s358_s9, %s1198_s4 }
  0x80   : >> { %367 = vst [vmem:[%s926_s5 + $0x8] sm:$0xff] %v366_v8  ;;  %v376_v13 = vld [vmem:[%s930_s6 + $0x30] sm:$0xff]  ;;  %v378_v14 = vld [vmem:[%s930_s6 + $0x38] sm:$0xff]  ;;  %v380_v15 = vld [vmem:[%s930_s6 + $0x40] sm:$0xff] }
  0x81   : >> { %369 = vst [vmem:[%s926_s5 + $0x10] sm:$0xff] %v368_v9  ;;  %s1362_s11 = smov (%p429_p6, %s428_s11), 0  ;;  %v382_v16 = vld [vmem:[%s930_s6 + $0x48] sm:$0xff]  ;;  %v384_v17 = vld [vmem:[%s930_s6 + $0x50] sm:$0xff]  ;;  %v386_v18 = vld [vmem:[%s930_s6 + $0x58] sm:$0xff] }
  0x82   : >> { %371 = vst [vmem:[%s926_s5 + $0x18] sm:$0xff] %v370_v10  ;;  %s631_s12 = sshll.u32 %s1362_s11, 8  ;;  %v388_v19 = vld [vmem:[%s930_s6 + $0x60] sm:$0xff]  ;;  %v390_v20 = vld [vmem:[%s930_s6 + $0x68] sm:$0xff]  ;;  %v392_v21 = vld [vmem:[%s930_s6 + $0x70] sm:$0xff]  ;;  %s1351_s8 = smov %s1362_s11 }
  0x83   : >> { %373 = vst [vmem:[%s926_s5 + $0x20] sm:$0xff] %v372_v11  ;;  %s1241_s14 = scalar_lea.vmem %s1011_s23, %s631_s12 [#allocation2]   ;;  %s1244_s15 = scalar_lea.vmem %s1051_s28, %s631_s12   ;;  %v394_v22 = vld [vmem:[%s930_s6 + $0x78] sm:$0xff]  ;;  %v396_v23 = vld [vmem:[%s930_s6 + $0x80] sm:$0xff]  ;;  %v398_v24 = vld [vmem:[%s930_s6 + $0x88] sm:$0xff] }
  0x84   : >> { %375 = vst [vmem:[%s926_s5 + $0x28] sm:$0xff] %v374_v12  ;;  %v400_v25 = vld [vmem:[%s930_s6 + $0x90] sm:$0xff]  ;;  %v402_v26 = vld [vmem:[%s930_s6 + $0x98] sm:$0xff]  ;;  %v404_v27 = vld [vmem:[%s930_s6 + $0xa0] sm:$0xff] }
  0x85   : >> { %377 = vst [vmem:[%s926_s5 + $0x30] sm:$0xff] %v376_v13  ;;  %v406_v28 = vld [vmem:[%s930_s6 + $0xa8] sm:$0xff]  ;;  %v408_v29 = vld [vmem:[%s930_s6 + $0xb0] sm:$0xff]  ;;  %v410_v30 = vld [vmem:[%s930_s6 + $0xb8] sm:$0xff] }
  0x86   : >> { %379 = vst [vmem:[%s926_s5 + $0x38] sm:$0xff] %v378_v14  ;;  %v412_v31 = vld [vmem:[%s930_s6 + $0xc0] sm:$0xff]  ;;  %v414_v32 = vld [vmem:[%s930_s6 + $0xc8] sm:$0xff]  ;;  %v416_v33 = vld [vmem:[%s930_s6 + $0xd0] sm:$0xff] }
  0x87   : >> { %381 = vst [vmem:[%s926_s5 + $0x40] sm:$0xff] %v380_v15  ;;  %v418_v34 = vld [vmem:[%s930_s6 + $0xd8] sm:$0xff]  ;;  %v420_v35 = vld [vmem:[%s930_s6 + $0xe0] sm:$0xff]  ;;  %v422_v36 = vld [vmem:[%s930_s6 + $0xe8] sm:$0xff] }
  0x88   : >> { %383 = vst [vmem:[%s926_s5 + $0x48] sm:$0xff] %v382_v16  ;;  %v424_v37 = vld [vmem:[%s930_s6 + $0xf0] sm:$0xff]  ;;  %v426_v38 = vld [vmem:[%s930_s6 + $0xf8] sm:$0xff]  ;;  %s1350_s6 = smov %s1241_s14 }
  0x89   : >> { %385 = vst [vmem:[%s926_s5 + $0x50] sm:$0xff] %v384_v17 }
  0x8a   : >> { %387 = vst [vmem:[%s926_s5 + $0x58] sm:$0xff] %v386_v18 }
  0x8b   : >> { %389 = vst [vmem:[%s926_s5 + $0x60] sm:$0xff] %v388_v19 }
  0x8c   : >> { %391 = vst [vmem:[%s926_s5 + $0x68] sm:$0xff] %v390_v20 }
  0x8d   : >> { %393 = vst [vmem:[%s926_s5 + $0x70] sm:$0xff] %v392_v21 }
  0x8e   : >> { %395 = vst [vmem:[%s926_s5 + $0x78] sm:$0xff] %v394_v22 }
  0x8f   : >> { %397 = vst [vmem:[%s926_s5 + $0x80] sm:$0xff] %v396_v23 }
  0x90   : >> { %399 = vst [vmem:[%s926_s5 + $0x88] sm:$0xff] %v398_v24 }
  0x91   : >> { %401 = vst [vmem:[%s926_s5 + $0x90] sm:$0xff] %v400_v25 }
  0x92   : >> { %403 = vst [vmem:[%s926_s5 + $0x98] sm:$0xff] %v402_v26 }
  0x93   : >> { %405 = vst [vmem:[%s926_s5 + $0xa0] sm:$0xff] %v404_v27 }
  0x94   : >> { %407 = vst [vmem:[%s926_s5 + $0xa8] sm:$0xff] %v406_v28 }
  0x95   : >> { %409 = vst [vmem:[%s926_s5 + $0xb0] sm:$0xff] %v408_v29 }
  0x96   : >> { %411 = vst [vmem:[%s926_s5 + $0xb8] sm:$0xff] %v410_v30 }
  0x97   : >> { %413 = vst [vmem:[%s926_s5 + $0xc0] sm:$0xff] %v412_v31 }
  0x98   : >> { %415 = vst [vmem:[%s926_s5 + $0xc8] sm:$0xff] %v414_v32 }
  0x99   : >> { %417 = vst [vmem:[%s926_s5 + $0xd0] sm:$0xff] %v416_v33 }
  0x9a   : >> { %419 = vst [vmem:[%s926_s5 + $0xd8] sm:$0xff] %v418_v34  ;;  %360 = sbr.rel (!%p357_p7) target bundleno = 126 (0x7e), region = 160 }
  0x9b   : >> { %421 = vst [vmem:[%s926_s5 + $0xe0] sm:$0xff] %v420_v35 }
  0x9c   : >> { %423 = vst [vmem:[%s926_s5 + $0xe8] sm:$0xff] %v422_v36 }
  0x9d   : >> { %425 = vst [vmem:[%s926_s5 + $0xf0] sm:$0xff] %v424_v37 }
  0x9e   : >> { %427 = vst [vmem:[%s926_s5 + $0xf8] sm:$0xff] %v426_v38  ;;  %s1349_s5 = smov %s1244_s15 }
  0x9f PF: > { %s1310_s16 = sand.u32 31, %s353_s27   ;;  %s647_s17 = sshll.u32 %s1198_s4, 8 }
  0xa0   : > { %s439_s18 = scalar_lea.vmem %s1011_s23, %s647_s17 [#allocation2]   ;;  %s441_s19 = scalar_lea.vmem %s1051_s28, %s647_s17  }
  0xa1   : > { %p636_p8 = scmp.le.s32.totalorder %s1310_s16, 0 }
  0xa2   : > { %s940_s20 = smov (!%p636_p8), %s441_s19   ;;  %s944_s21 = smov (!%p636_p8), %s439_s18  }
  0xa3   : > { %580 = sbr.rel (%p636_p8) target bundleno = 176 (0xb0), region = 165  ;;  %s948_s22 = smov (!%p636_p8), 0  }
  0xa4   : > { %s952_s24 = smov (!%p636_p8), 0  }
  0xa8 LB: >> { %v451_v39 = vld [vmem:[%s946_s21] sm:$0xff]  ;;  %s453_s25 = sadd.s32 1, %s950_s22  ;;  %s445_s24 = sadd.s32 1, %s954_s24   ;;  %s954_s24 = sphi %s952_s24, %s445_s24   ;;  %s950_s22 = sphi %s948_s22, %s949_s22   ;;  %s946_s21 = sphi %s944_s21, %s458_s21   ;;  %s942_s20 = sphi %s940_s20, %s459_s20  }
  0xa9   : >> { %452 = vst [vmem:[%s942_s20] sm:$0xff] %v451_v39  ;;  %p454_p9 = scmp.ge.s32.totalorder %s453_s25, %s1310_s16  ;;  %p444_p10 = scmp.ge.s32.totalorder %s445_s24, %s1310_s16 }
  0xab   : >> { %s1364_s25 = smov (%p454_p9, %s453_s25), 0  ;;  %447 = sbr.rel (!%p444_p10) target bundleno = 168 (0xa8), region = 171 }
  0xac   : >> { %s637_s27 = sshll.u32 %s1364_s25, 3  ;;  %s949_s22 = smov %s1364_s25  }
  0xad   : >> { %s458_s21 = scalar_lea.vmem %s439_s18, %s637_s27 [#allocation2]   ;;  %s459_s20 = scalar_lea.vmem %s441_s19, %s637_s27  }
  0xb0 PF: > { %s956_s4 = smov 1  }
  0xb1   : > { %s460_s5 = sshll.u32 %s956_s4, %s1058_s30 }
  0xb2   : > { %s639_s6 = sadd.s32 4294967295, %s460_s5 }
  0xb3   : > { %v470_v40 = vld [vmem:[%s350_s2] sm:%s639_s6] }
  0xb4   : > { %471 = vst [vmem:[%s352_s3] sm:%s639_s6] %v470_v40 }
  0xb5 PF: > { %p640_p11 = scmp.ge.u32.totalorder %s1053_s29, 8 }
  0xb6   : > { %s957_s8 = smov (!%p640_p11), 1  }
  0xb7   : > { %220 = sbr.rel (%p640_p11) target bundleno = 190 (0xbe), region = 40  ;;  %s221_s9 = sshll.u32 (!%p640_p11), %s957_s8, %s1053_s29 }
  0xb8   : > { %s641_s11 = sadd.s32 (!%p640_p11), 4294967295, %s221_s9 }
  0xbc   : > { %v231_v41 = vld [vmem:[%s1011_s23] sm:%s641_s11] }
  0xbd   : > { %232 = vst [vmem:[%s1051_s28] sm:%s641_s11] %v231_v41 }
  0xbe PF: > { %p8_p12 = scmp.ge.s32.totalorder %s981_s10, 4   ;;  %s1352_s6 = smov %s886_s7 }
  0xbf   : > { %s1353_s7 = smov %s988_s13  ;;  %s1354_s8 = smov %s981_s10 }
  0xc0   :  { %10 = sbr.rel (!%p8_p12) target bundleno = 2 (0x2), region = 182 }

</bundles_post_ra>
